<compile_context>
chip_gen: v6e
topology: v6e:2x2x1
jax: 0.10.0
libtpu: 0.0.40
codegen_flags: <defaults>
</compile_context>

<pallas_src>
import jax
import jax.numpy as jnp
from jax import lax
from jax.experimental import pallas as pl
from jax.experimental.pallas import tpu as pltpu

_LOSS_LANES = 128                       # lane-dense per-tile loss block width
_VMEM_BUDGET = 48 * 1024 * 1024         # leaves headroom on v7x's 64 MiB/TC


def _round_up(x, m):
    return (x + m - 1) // m * m


def _choose_row_tile(n_rows, vocab):
    """Largest MXU-friendly row tile whose working set fits the VMEM budget."""
    rt = min(256, _round_up(n_rows, 8))          # never tile past the problem
    table = vocab * vocab * 4                    # single-buffered (resident)
    while rt > 8:
        blocks = 2 * (rt * vocab * 4             # logits block (double-buffered)
                      + 2 * rt * 128 * 4         # token/target id blocks (lane-padded)
                      + 8 * _LOSS_LANES * 4)     # per-tile loss block
        if table + blocks <= _VMEM_BUDGET:
            break
        rt //= 2
    return max(rt, 8)


def _bigram_logits_kernel(tok_ref, emb_ref, logits_ref):
    # tok_ref: (TM, 1) int32 ; emb_ref: (V, V) f32 resident ; logits_ref: (TM, V) f32
    tm, v = logits_ref.shape
    ids = tok_ref[...]                                   # (TM, 1)
    col = lax.broadcasted_iota(jnp.int32, (tm, v), 1)    # (TM, V)
    onehot = (col == ids).astype(jnp.float32)
    logits_ref[...] = jnp.dot(onehot, emb_ref[...],
                              preferred_element_type=jnp.float32)


def _bigram_ce_kernel(tok_ref, tgt_ref, emb_ref, logits_ref, loss_ref):
    # tok_ref/tgt_ref: (TM, 1) int32 ; emb_ref: (V, V) f32 resident
    # logits_ref: (TM, V) f32 ; loss_ref: (1, 1, 128) f32 (per-tile loss sum,
    # broadcast across lanes -> unmasked lane-dense store)
    tm, v = logits_ref.shape
    ids = tok_ref[...]
    tgt = tgt_ref[...]
    col = lax.broadcasted_iota(jnp.int32, (tm, v), 1)

    # Embedding gather as one-hot matmul on the MXU (exact for f32: one 1.0 per row).
    onehot = (col == ids).astype(jnp.float32)
    logits = jnp.dot(onehot, emb_ref[...], preferred_element_type=jnp.float32)
    logits_ref[...] = logits

    # Cross entropy per row: logsumexp(logits) - logits[target]
    m = jnp.max(logits, axis=-1, keepdims=True)                          # (TM, 1)
    lse = m + jnp.log(jnp.sum(jnp.exp(logits - m), axis=-1, keepdims=True))
    picked = jnp.sum(jnp.where(col == tgt, logits, 0.0),
                     axis=-1, keepdims=True)                             # (TM, 1)
    valid = (tgt >= 0).astype(jnp.float32)        # padded rows carry target = -1
    per_row = (lse - picked) * valid                                     # (TM, 1)

    tile_sum = jnp.sum(per_row, axis=0, keepdims=True)                   # (1, 1)
    loss_ref[0] = jnp.broadcast_to(tile_sum, (1, _LOSS_LANES))


def bigram_forward(x, emb, targets=None, *, row_tile=None):
    """Pallas implementation of BigramLanguageModel.forward."""
    B, T = x.shape
    V = emb.shape[0]
    assert emb.shape == (V, V)
    # NOTE: if the vocabulary were zero-padded to a multiple of 128, the padded
    # columns would need a -inf mask before the logsumexp; here V itself must
    # already be lane-aligned.
    assert V % 128 == 0, "vocab_size must be a multiple of 128 (lane tiling)"
    # TODO(synk): for vocabularies whose (V,V) table no longer fits VMEM, swap
    # the one-hot matmul for a scalar-prefetch / manual-DMA row gather.

    N = B * T
    if row_tile is None:
        row_tile = _choose_row_tile(N, V)
    N_pad = _round_up(N, row_tile)
    num_tiles = N_pad // row_tile

    tok = jnp.pad(x.reshape(-1).astype(jnp.int32),
                  (0, N_pad - N)).reshape(N_pad, 1)

    compiler_params = pltpu.CompilerParams(
        dimension_semantics=("parallel",),          # shards across TCs (v7x megacore)
        vmem_limit_bytes=_VMEM_BUDGET)

    # Whole table resident in VMEM once (no per-step DMA, no double-buffering).
    emb_spec = pl.BlockSpec(memory_space=pltpu.MemorySpace.VMEM)
    ids_spec = pl.BlockSpec((row_tile, 1), lambda i: (i, 0))
    logits_spec = pl.BlockSpec((row_tile, V), lambda i: (i, 0))   # lane-dense output

    if targets is None:
        logits_pad = pl.pallas_call(
            _bigram_logits_kernel,
            out_shape=jax.ShapeDtypeStruct((N_pad, V), jnp.float32),
            grid=(num_tiles,),
            in_specs=[ids_spec, emb_spec],
            out_specs=logits_spec,
            compiler_params=compiler_params,
        )(tok, emb)
        return logits_pad[:N].reshape(B, T, V), None

    tgt = jnp.pad(targets.reshape(-1).astype(jnp.int32),
                  (0, N_pad - N), constant_values=-1).reshape(N_pad, 1)

    logits_pad, loss_tiles = pl.pallas_call(
        _bigram_ce_kernel,
        out_shape=(
            jax.ShapeDtypeStruct((N_pad, V), jnp.float32),
            jax.ShapeDtypeStruct((num_tiles, 1, _LOSS_LANES), jnp.float32),
        ),
        grid=(num_tiles,),
        in_specs=[ids_spec, ids_spec, emb_spec],
        out_specs=(
            logits_spec,
            pl.BlockSpec((1, 1, _LOSS_LANES), lambda i: (i, 0, 0)),
        ),
        compiler_params=compiler_params,
    )(tok, tgt, emb)

    # Tiny host-side glue: mean over B*T rows from the per-tile partial sums.
    loss = jnp.sum(loss_tiles[:, 0, 0]) / N
    return logits_pad[:N], loss


if __name__ == "__main__":
    key = jax.random.PRNGKey(0)
    k_emb, k_x, k_t = jax.random.split(key, 3)

    vocab_size = 128
    B, T = 2, 8

    # nn.Embedding default init ~ N(0, 1)
    emb = jax.random.normal(k_emb, (vocab_size, vocab_size), dtype=jnp.float32)
    x = jax.random.randint(k_x, (B, T), 0, vocab_size, dtype=jnp.int32)
    targets = jax.random.randint(k_t, (B, T), 0, vocab_size, dtype=jnp.int32)

    # --- with targets: (logits (B*T, V), scalar loss) ---
    logits, loss = bigram_forward(x, emb, targets)
    jax.block_until_ready((logits, loss))

    # --- without targets: (logits (B, T, V), None) ---
    logits_nt, loss_nt = bigram_forward(x, emb, None)
    jax.block_until_ready(logits_nt)

    # Pure-JAX reference (embedding gather + cross entropy)
    ref_logits = emb[x.reshape(-1)]                                     # (B*T, V)
    lse = jax.scipy.special.logsumexp(ref_logits, axis=-1)
    ref_loss = jnp.mean(lse - ref_logits[jnp.arange(B * T),
                                         targets.reshape(-1)])

    assert logits.shape == (B * T, vocab_size)
    assert jnp.allclose(logits, ref_logits, atol=1e-5, rtol=1e-5)
    assert jnp.allclose(loss, ref_loss, atol=1e-5, rtol=1e-5)
    assert logits_nt.shape == (B, T, vocab_size) and loss_nt is None
    assert jnp.allclose(logits_nt.reshape(B * T, vocab_size), ref_logits,
                        atol=1e-5, rtol=1e-5)

    print("KERNEL_OK")
</pallas_src>

<mosaic_0001>
module attributes {stable_mosaic.version = 11 : i64} {
  func.func @_bigram_ce_kernel(%arg0: i32, %arg1: memref<16x1xi32, #tpu.memory_space<vmem>>, %arg2: memref<16x1xi32, #tpu.memory_space<vmem>>, %arg3: memref<128x128xf32, #tpu.memory_space<vmem>>, %arg4: memref<16x128xf32, #tpu.memory_space<vmem>>, %arg5: memref<1x1x128xf32, #tpu.memory_space<vmem>>) attributes {dimension_semantics = [#tpu.dimension_semantics<parallel>], iteration_bounds = array<i64: 1>, scalar_prefetch = 0 : i64, scratch_operands = 0 : i64, tpu.core_type = #tpu.core_type<tc>, window_params = [{transform_indices = @transform_0, window_bounds = array<i64: 16, 1>}, {transform_indices = @transform_1, window_bounds = array<i64: 16, 1>}, {pipeline_mode = #tpu.pipeline_mode<synchronous>, transform_indices = @transform_2, window_bounds = array<i64: 128, 128>}, {transform_indices = @transform_3, window_bounds = array<i64: 16, 128>}, {transform_indices = @transform_4, window_bounds = array<i64: 1, 1, 128>}]} {
    %c0 = arith.constant 0 : index
    %c0_0 = arith.constant 0 : index
    %0 = vector.load %arg1[%c0, %c0_0] : memref<16x1xi32, #tpu.memory_space<vmem>>, vector<16x1xi32>
    %c0_1 = arith.constant 0 : index
    %c0_2 = arith.constant 0 : index
    %1 = vector.load %arg2[%c0_1, %c0_2] : memref<16x1xi32, #tpu.memory_space<vmem>>, vector<16x1xi32>
    %2 = tpu.iota {dimensions = array<i32: 1>} : vector<16x128xi32>
    %3 = vector.broadcast %0 : vector<16x1xi32> to vector<16x128xi32>
    %4 = arith.cmpi eq, %2, %3 : vector<16x128xi32>
    %5 = arith.extui %4 : vector<16x128xi1> to vector<16x128xi32>
    %6 = arith.sitofp %5 : vector<16x128xi32> to vector<16x128xf32>
    %c0_3 = arith.constant 0 : index
    %c0_4 = arith.constant 0 : index
    %7 = vector.load %arg3[%c0_3, %c0_4] : memref<128x128xf32, #tpu.memory_space<vmem>>, vector<128x128xf32>
    %cst = arith.constant dense<0.000000e+00> : vector<16x128xf32>
    %8 = tpu.matmul %6, %7, %cst {dimension_numbers = #tpu.dot_dimension_numbers<[1], [0], [0], [1], [0, 0, 1, 1], [], []>} : vector<16x128xf32>, vector<128x128xf32>, vector<16x128xf32> -> vector<16x128xf32>
    %c0_5 = arith.constant 0 : index
    %c0_6 = arith.constant 0 : index
    %9 = vector.load %arg4[%c0_5, %c0_6] : memref<16x128xf32, #tpu.memory_space<vmem>>, vector<16x128xf32>
    tpu.vector_store %arg4[%c0_5, %c0_6], %8 {strides = array<i32>} : memref<16x128xf32, #tpu.memory_space<vmem>>, vector<16x128xf32>,
    %cst_7 = arith.constant dense<0xFF800000> : vector<16xf32>
    %10 = vector.multi_reduction <maximumf>, %8, %cst_7 [1] : vector<16x128xf32> to vector<16xf32>
    %11 = vector.shape_cast %10 : vector<16xf32> to vector<16x1xf32>
    %12 = vector.broadcast %11 : vector<16x1xf32> to vector<16x128xf32>
    %13 = arith.subf %8, %12 : vector<16x128xf32>
    %14 = math.exp %13 : vector<16x128xf32>
    %cst_8 = arith.constant dense<0.000000e+00> : vector<16xf32>
    %15 = vector.multi_reduction <add>, %14, %cst_8 [1] : vector<16x128xf32> to vector<16xf32>
    %16 = vector.shape_cast %15 : vector<16xf32> to vector<16x1xf32>
    %17 = math.log %16 : vector<16x1xf32>
    %18 = arith.addf %11, %17 : vector<16x1xf32>
    %19 = vector.broadcast %1 : vector<16x1xi32> to vector<16x128xi32>
    %20 = arith.cmpi eq, %2, %19 : vector<16x128xi32>
    %cst_9 = arith.constant 0.000000e+00 : f32
    %21 = vector.broadcast %cst_9 : f32 to vector<16x128xf32>
    %22 = arith.select %20, %8, %21 : vector<16x128xi1>, vector<16x128xf32>
    %cst_10 = arith.constant dense<0.000000e+00> : vector<16xf32>
    %23 = vector.multi_reduction <add>, %22, %cst_10 [1] : vector<16x128xf32> to vector<16xf32>
    %24 = vector.shape_cast %23 : vector<16xf32> to vector<16x1xf32>
    %c0_i32 = arith.constant 0 : i32
    %25 = vector.broadcast %c0_i32 : i32 to vector<16x1xi32>
    %26 = arith.cmpi sge, %1, %25 : vector<16x1xi32>
    %27 = arith.extui %26 : vector<16x1xi1> to vector<16x1xi32>
    %28 = arith.sitofp %27 : vector<16x1xi32> to vector<16x1xf32>
    %29 = arith.subf %18, %24 : vector<16x1xf32>
    %30 = arith.mulf %29, %28 : vector<16x1xf32>
    %cst_11 = arith.constant dense<0.000000e+00> : vector<1xf32>
    %31 = vector.multi_reduction <add>, %30, %cst_11 [0] : vector<16x1xf32> to vector<1xf32>
    %32 = vector.shape_cast %31 : vector<1xf32> to vector<1x1xf32>
    %33 = vector.shape_cast %32 : vector<1x1xf32> to vector<1x1xf32>
    %34 = vector.broadcast %33 : vector<1x1xf32> to vector<1x128xf32>
    %c0_12 = arith.constant 0 : index
    %c0_13 = arith.constant 0 : index
    %c0_14 = arith.constant 0 : index
    %35 = vector.load %arg5[%c0_12, %c0_13, %c0_14] : memref<1x1x128xf32, #tpu.memory_space<vmem>>, vector<1x1x128xf32>
    %36 = vector.shape_cast %35 : vector<1x1x128xf32> to vector<1x128xf32>
    %37 = vector.shape_cast %34 : vector<1x128xf32> to vector<1x1x128xf32>
    tpu.vector_store %arg5[%c0_12, %c0_13, %c0_14], %37 {strides = array<i32>} : memref<1x1x128xf32, #tpu.memory_space<vmem>>, vector<1x1x128xf32>,
    return
  }
  func.func @transform_0(%arg0: i32) -> (i32, i32) {
    %c0_i32 = arith.constant 0 : i32
    %c0_i32_0 = arith.constant 0 : i32
    return %arg0, %c0_i32 : i32, i32
  }
  func.func @transform_1(%arg0: i32) -> (i32, i32) {
    %c0_i32 = arith.constant 0 : i32
    %c0_i32_0 = arith.constant 0 : i32
    return %arg0, %c0_i32 : i32, i32
  }
  func.func @transform_2(%arg0: i32) -> (i32, i32) {
    %c0_i32 = arith.constant 0 : i32
    %c0_i32_0 = arith.constant 0 : i32
    %c0_i32_1 = arith.constant 0 : i32
    return %c0_i32, %c0_i32_0 : i32, i32
  }
  func.func @transform_3(%arg0: i32) -> (i32, i32) {
    %c0_i32 = arith.constant 0 : i32
    %c0_i32_0 = arith.constant 0 : i32
    return %arg0, %c0_i32 : i32, i32
  }
  func.func @transform_4(%arg0: i32) -> (i32, i32, i32) {
    %c0_i32 = arith.constant 0 : i32
    %c0_i32_0 = arith.constant 0 : i32
    %c0_i32_1 = arith.constant 0 : i32
    return %arg0, %c0_i32, %c0_i32_0 : i32, i32, i32
  }
}

</mosaic_0001>

<bundles_post_ra>
// kernel: tpu_custom_call.1
= control target key start
LH: loop header
LB: loop body
LE: loop exit
PB: predicated region body
PF: predicated region fallthrough
CT: control target
= control target key end

     0   :  { %10 = vsyncpa [#allocation3], 0  ;;  %s441_s0 = inlined_call_operand.vmem [shape: s32[16,1], index: 0, kind: input, shape index: {}]   ;;  %s442_s1 = inlined_call_operand.vmem [shape: s32[16,1], index: 1, kind: input, shape index: {}]   ;;  %s443_s2 = inlined_call_operand.hbm [shape: f32[128,128], index: 2, kind: input, shape index: {}]   ;;  %s444_s3 = inlined_call_operand.hbm [shape: f32[16,128], index: 3, kind: output, shape index: {0}]   ;;  %s445_s4 = inlined_call_operand.hbm [shape: f32[1,1,128], index: 4, kind: output, shape index: {1}]  }
   0x1   :  { %11 = vsyncpa [#allocation4], 0 }
   0x2   :  { %12 = vsyncpa [#allocation7], 0  ;;  %s377_s15 = smov [#allocation2]  }
   0x3   :  { %s22_s16 = sshll.u32 %s377_s15, 4  ;;  %s23_s16 = int_to_ptr.vmem [resolvable:$true] %s22_s16 }
   0x4   :  { %s319_s17 = scalar_lea.vmem %s23_s16, 2048  ;;  %p324_p1 = scmp.lt.s32.totalorder %s23_s16, %s23_s16 }
   0x5   :  { %p320_p0 = scmp.ne.s32.totalorder %s23_s16, %s319_s17  ;;  %p325_p2 = scmp.lt.s32.totalorder %s319_s17, %s319_s17 }
   0x7   :  { %p326_p3 = por %p325_p2, %p324_p1 }
   0x9   :  { %p327_p4 = pnand %p326_p3, %p320_p0 }
   0xb   :  { %330 = shalt.err (!%p327_p4)
}
   0xc   :  { %s378_s18 = smov 128   ;;  %s379_s19 = smov 8  }
   0xd   :  { %28 = dma.hbm_to_vmem [thread:$0]  %s443_s2, 2048, %s23_s16, [#allocation3], %s378_s18, %s378_s18, %s379_s19  }
   0xe   :  { %371 = dma.done.wait [#allocation3], 2048  }
   0xf   :  { %372 = vsyncadd [#allocation3], 4294965248  ;;  %v380_v0 = vmov 0   ;;  %v32_v1 = vld [vmem:[%s441_s0] sm:$0xff]  ;;  %v65_v2 = vld [vmem:[#allocation2 + $0x78] sm:$0xff]  ;;  %v36_v20 = vlaneseq  ;;  %v381_v23 = vmov 1.0  }
  0x10   :  { %301 = vset.pattern.permute.xlu0 %v380_v0  ;;  %302 = vset.pattern.permute.xlu1 %v380_v0  ;;  %v64_v3 = vld [vmem:[#allocation2 + $0x70] sm:$0xff]  ;;  %v33_v4 = vld [vmem:[%s441_s0 + $0x8] sm:$0xff]  ;;  %v62_v6 = vld [vmem:[#allocation2 + $0x60] sm:$0xff]  ;;  %v382_v49 = vmov 0.0   ;;  %vm187_vm6 = vcmask 7168  }
  0x11   :  { %39 = vperm.xlu0 %301, %v32_v1   ;;  %258 = vmatprep.subr.mxu0 %v65_v2  ;;  %v63_v5 = vld [vmem:[#allocation2 + $0x68] sm:$0xff]  ;;  %v425_v7 = vld [vmem:[%s442_s1] sm:$0xff]  ;;  %v61_v8 = vld [vmem:[#allocation2 + $0x58] sm:$0xff]  ;;  %v37_v21 = vand.u32 127, %v36_v20 }
  0x12   :  { %259 = vmatpush3.msra.mxu0 %v65_v2  ;;  %v60_v9 = vld [vmem:[#allocation2 + $0x50] sm:$0xff]  ;;  %v59_v10 = vld [vmem:[#allocation2 + $0x48] sm:$0xff]  ;;  %v58_v11 = vld [vmem:[#allocation2 + $0x40] sm:$0xff]  ;;  %vm177_vm4 = vcmp.ge.s32.totalorder %v425_v7, 0 }
  0x13   :  { %260 = vmatprep.subr.mxu0 %v64_v3  ;;  %v57_v12 = vld [vmem:[#allocation2 + $0x38] sm:$0xff]  ;;  %v56_v13 = vld [vmem:[#allocation2 + $0x30] sm:$0xff]  ;;  %v55_v14 = vld [vmem:[#allocation2 + $0x28] sm:$0xff]  ;;  %v238_v50 = vsel %vm177_vm4, 1.0, %v382_v49 }
  0x14   :  { %261 = vmatpush3.msra.mxu0 %v64_v3  ;;  %v54_v15 = vld [vmem:[#allocation2 + $0x20] sm:$0xff]  ;;  %v53_v16 = vld [vmem:[#allocation2 + $0x18] sm:$0xff]  ;;  %v52_v17 = vld [vmem:[#allocation2 + $0x10] sm:$0xff] }
  0x15   :  { %42 = vperm.xlu0 %301, %v33_v4   ;;  %262 = vmatprep.subr.mxu0 %v63_v5  ;;  %v51_v18 = vld [vmem:[#allocation2 + $0x8] sm:$0xff]  ;;  %v50_v19 = vld [vmem:[#allocation2] sm:$0xff] }
  0x16   :  { %263 = vmatpush3.msra.mxu0 %v63_v5  ;;  %v35_v27 = vld [vmem:[%s442_s1 + $0x8] sm:$0xff]  ;;  %s383_s1 = smov [#allocation5]  }
  0x17   :  { %264 = vmatprep.subr.mxu0 %v62_v6  ;;  %vm178_vm5 = vcmp.ge.s32.totalorder %v35_v27, 0  ;;  %s208_s28 = sshll.u32 %s383_s1, 4  ;;  %s209_s28 = int_to_ptr.vmem [resolvable:$true] %s208_s28 }
  0x18   :  { %265 = vmatpush3.msra.mxu0 %v62_v6  ;;  %v239_v52 = vsel %vm178_vm5, 1.0, %v382_v49  ;;  %s331_s29 = scalar_lea.vmem %s209_s28, 256  ;;  %p336_p6 = scmp.lt.s32.totalorder %s209_s28, %s209_s28 }
  0x19   :  { %164 = vperm.xlu0 %301, %v425_v7   ;;  %266 = vmatprep.subr.mxu0 %v61_v8  ;;  %p332_p5 = scmp.ne.s32.totalorder %s209_s28, %s331_s29  ;;  %p337_p7 = scmp.lt.s32.totalorder %s331_s29, %s331_s29 }
  0x1a   :  { %267 = vmatpush3.msra.mxu0 %v61_v8 }
  0x1b   :  { %268 = vmatprep.subr.mxu0 %v60_v9  ;;  %p338_p8 = por %p337_p7, %p336_p6 }
  0x1c   :  { %269 = vmatpush3.msra.mxu0 %v60_v9 }
  0x1d   :  { %270 = vmatprep.subr.mxu0 %v59_v10  ;;  %p339_p9 = pnand %p338_p8, %p332_p5 }
  0x1e   :  { %271 = vmatpush3.msra.mxu0 %v59_v10 }
  0x1f   :  { %272 = vmatprep.subr.mxu0 %v58_v11 }
  0x20   :  { %273 = vmatpush3.msra.mxu0 %v58_v11 }
  0x21   :  { %274 = vmatprep.subr.mxu0 %v57_v12 }
  0x22   :  { %275 = vmatpush3.msra.mxu0 %v57_v12 }
  0x23   :  { %276 = vmatprep.subr.mxu0 %v56_v13 }
  0x24   :  { %277 = vmatpush3.msra.mxu0 %v56_v13 }
  0x25   :  { %278 = vmatprep.subr.mxu0 %v55_v14 }
  0x26   :  { %279 = vmatpush3.msra.mxu0 %v55_v14 }
  0x27   :  { %280 = vmatprep.subr.mxu0 %v54_v15 }
  0x28   :  { %281 = vmatpush3.msra.mxu0 %v54_v15 }
  0x29   :  { %282 = vmatprep.subr.mxu0 %v53_v16 }
  0x2a   :  { %283 = vmatpush3.msra.mxu0 %v53_v16 }
  0x2b   :  { %284 = vmatprep.subr.mxu0 %v52_v17 }
  0x2c   :  { %285 = vmatpush3.msra.mxu0 %v52_v17 }
  0x2d   :  { %286 = vmatprep.subr.mxu0 %v51_v18 }
  0x2e   :  { %287 = vmatpush3.msra.mxu0 %v51_v18 }
  0x2f   :  { %288 = vmatprep.subr.mxu0 %v50_v19 }
  0x30   :  { %289 = vmatpush3.msra.mxu0 %v50_v19 }
  0x8c   :  { %v40_v22 = vpop.permute.xlu0 %39 }
  0x8d   :  { %vm44_vm0 = vcmp.eq.s32.totalorder %v37_v21, %v40_v22 }
  0x8e   :  { %290 = vmatprep.mubr.msk.f32.mxu0 %vm44_vm0, %v381_v23 }
  0x90   :  { %v43_v24 = vpop.permute.xlu0 %42 }
  0x91   :  { %vm45_vm1 = vcmp.eq.s32.totalorder %v37_v21, %v43_v24 }
  0x92   :  { %291 = vmatmul.mubr.msk.f32.vlgmr.msra.gmra.mxu0 %vm45_vm1, %v381_v23 }
  0x94   :  { %v165_v35 = vpop.permute.xlu0 %164 }
  0x95   :  { %vm169_vm2 = vcmp.eq.s32.totalorder %v37_v21, %v165_v35 }
 0x152   :  { %v292_v25 = vpop.f32.mrf.mxu0 }
 0x153   :  { %142 = vst [vmem:[#allocation5 + $0x8] sm:$0xff] %v292_v25 }
 0x154   :  { %v132_v26 = vpop.f32.mrf.mxu0 }
 0x155   :  { %141 = vst [vmem:[#allocation5] sm:$0xff] %v132_v26  ;;  %143 = vmax.xlane.f32.xlu1 %v132_v26  ;;  %v171_v38 = vsel %vm169_vm2, %v132_v26, 0.0 }
 0x159   :  { %145 = vmax.xlane.f32.xlu1 %v292_v25 }
 0x16a   :  { %167 = vperm.xlu1 %302, %v35_v27  }
 0x1de   :  { %v144_v28 = vpop.xlane.xlu1 %143 }
 0x1df   :  { %v147_v29 = vsub.f32 %v132_v26, %v144_v28 }
 0x1e1   :  { %v149_v30 = vmul.f32 1.442695, %v147_v29 }
 0x1e2   :  { %v146_v31 = vpop.xlane.xlu1 %145 }
 0x1e3   :  { %303 = vpow2.f32 %v149_v30  ;;  %v148_v32 = vsub.f32 %v292_v25, %v146_v31 }
 0x1e5   :  { %v151_v33 = vmul.f32 1.442695, %v148_v32 }
 0x1e6   :  { %v168_v36 = vpop.permute.xlu1 %167 }
 0x1e7   :  { %305 = vpow2.f32 %v151_v33  ;;  %vm170_vm3 = vcmp.eq.s32.totalorder %v37_v21, %v168_v36 }
 0x1e8   :  { %v172_v39 = vsel %vm170_vm3, %v292_v25, 0.0 }
 0x1f0   :  { %v304_v34 = vpop.eup %303 }
 0x1f1   :  { %153 = vadd.xlane.f32.xlu0 %v304_v34 }
 0x1f4   :  { %v306_v37 = vpop.eup %305 }
 0x1f5   :  { %155 = vadd.xlane.f32.xlu1 %v306_v37  ;;  %173 = vadd.xlane.f32.xlu0 %v171_v38 }
 0x1f9   :  { %175 = vadd.xlane.f32.xlu0 %v172_v39 }
 0x27a   :  { %v154_v40 = vpop.xlane.xlu0 %153 }
 0x27b   :  { %307 = vlog2.f32 %v154_v40 }
 0x27e   :  { %v156_v41 = vpop.xlane.xlu1 %155  ;;  %v174_v44 = vpop.xlane.xlu0 %173 }
 0x27f   :  { %309 = vlog2.f32 %v156_v41 }
 0x282   :  { %v176_v53 = vpop.xlane.xlu0 %175 }
 0x288   :  { %v308_v42 = vpop.eup %307 }
 0x289   :  { %v158_v43 = vmul.f32 0.6931472, %v308_v42 }
 0x28b   :  { %v161_v45 = vadd.f32 %v158_v43, %v144_v28 }
 0x28c   :  { %v310_v46 = vpop.eup %309 }
 0x28d   :  { %v160_v47 = vmul.f32 0.6931472, %v310_v46  ;;  %v183_v48 = vsub.f32 %v161_v45, %v174_v44 }
 0x28f   :  { %v162_v51 = vadd.f32 %v160_v47, %v146_v31  ;;  %v185_v54 = vmul.f32 %v238_v50, %v183_v48 }
 0x291   :  { %v184_v55 = vsub.f32 %v162_v51, %v176_v53  ;;  %v188_v57 = vsel %vm187_vm6, %v185_v54, 0.0 }
 0x293   :  { %v186_v56 = vmul.f32 %v239_v52, %v184_v55 }
 0x295   :  { %v189_v58 = vsel %vm187_vm6, %v186_v56, 0.0 }
 0x296   :  { %v190_v59 = vadd.f32 %v189_v58, %v188_v57 }
 0x298   :  { %v191_v60 = vrot.slane %v190_v59, 4 }
 0x29a   :  { %v192_v61 = vadd.f32 %v191_v60, %v190_v59 }
 0x29c   :  { %v193_v62 = vrot.slane %v192_v61, 2 }
 0x29e   :  { %v194_v63 = vadd.f32 %v193_v62, %v192_v61 }
 0x2a0   :  { %v195_v0 = vrot.slane %v194_v63, 1 }
 0x2a1   :  { %342 = shalt.err (!%p339_p9)
}
 0x2a2   :  { %214 = dma.vmem_to_hbm [thread:$0]  %s209_s28, 256, %s444_s3, [#allocation4], %s378_s18, %s378_s18, %s379_s19   ;;  %v196_v1 = vadd.f32 %v195_v0, %v194_v63 }
 0x2a3   :  { %s384_s6 = smov [#allocation6]  }
 0x2a4   :  { %199 = vperm.xlu0 %301, %v196_v1   ;;  %s221_s7 = sshll.u32 %s384_s6, 4  ;;  %s222_s7 = int_to_ptr.vmem [resolvable:$true] %s221_s7 }
 0x2a5   :  { %s351_s8 = scalar_lea.vmem %s222_s7, 16  ;;  %s355_s9 = scalar_lea.vmem %s222_s7, 32 }
 0x2a6   :  { %p352_p10 = scmp.ne.s32.totalorder %s222_s7, %s351_s8  ;;  %p356_p11 = scmp.lt.s32.totalorder %s222_s7, %s222_s7 }
 0x2a7   :  { %p357_p12 = scmp.lt.s32.totalorder %s355_s9, %s351_s8 }
 0x2a9   :  { %p358_p13 = por %p357_p12, %p356_p11 }
 0x2ab   :  { %p359_p0 = pnand %p358_p13, %p352_p10 }
 0x31f   :  { %v200_v2 = vpop.permute.xlu0 %199 }
 0x320   :  { %202 = vst [vmem:[#allocation6] sm:$0x1] %v200_v2 }
 0x321   :  { %362 = shalt.err (!%p359_p0)
}
 0x322   :  { %224 = dma.vmem_to_hbm [thread:$0]  %s222_s7, 16, %s445_s4, [#allocation7]  }
 0x323   :  { %373 = dma.done.wait [#allocation4], 256  }
 0x324   :  { %374 = vsyncadd [#allocation4], 4294967040 }
 0x325   :  { %375 = dma.done.wait [#allocation7], 16  }
 0x326   :  { %376 = vsyncadd [#allocation7], 4294967280 }
 0x327   :  { %231 = vsyncpa [#allocation3], 1 }
 0x328   :  { %232 = vsyncpa [#allocation4], 1 }
 0x329   :  { %233 = vsyncpa [#allocation7], 1 }

</bundles_post_ra>
